<compile_context>
chip_gen: v7x
topology: tpu7x:2x2x1
jax: 0.10.0
libtpu: 0.0.40
codegen_flags: <defaults>
</compile_context>

<pallas_src>
import functools

import jax
import jax.numpy as jnp
from jax.experimental import pallas as pl
from jax.experimental.pallas import tpu as pltpu

# bf16 matmul operands with f32 accumulation (MXU-native on all generations).
# Documented fp32-parity tradeoff vs. the fp32 PyTorch reference.
MATMUL_IN_BF16 = True


@functools.lru_cache(maxsize=None)
def _vmem_limit():
    """Per-generation VMEM budget: ~85% of physical, capped at 112 MiB.

    v7x: 64 MiB physical -> ~54 MiB; v5e/v6e: 128 MiB physical -> ~108 MiB.
    """
    cap = 64 * 1024 * 1024
    try:
        cap = int(getattr(pltpu.get_tpu_info(), "vmem_capacity_bytes", cap))
    except Exception:
        pass
    return max(32 * 1024 * 1024, min(int(cap * 0.85), 112 * 1024 * 1024))


# ----------------------------------------------------------------------------
# In-kernel elementwise helpers (only ops guaranteed to lower on TPU)
# ----------------------------------------------------------------------------
def _mm(a, b):
    if MATMUL_IN_BF16:
        a = a.astype(jnp.bfloat16)
        b = b.astype(jnp.bfloat16)
    return jnp.dot(a, b, preferred_element_type=jnp.float32)


def _sigmoid(x):
    return 1.0 / (1.0 + jnp.exp(-x))


def _erf(x):
    # Abramowitz & Stegun 7.1.26; max abs err ~1.5e-7.
    a1, a2, a3, a4, a5 = 0.254829592, -0.284496736, 1.421413741, -1.453152027, 1.061405429
    p = 0.3275911
    sgn = jnp.where(x >= 0.0, 1.0, -1.0)
    z = jnp.abs(x)
    t = 1.0 / (1.0 + p * z)
    poly = ((((a5 * t + a4) * t + a3) * t + a2) * t + a1) * t
    return sgn * (1.0 - poly * jnp.exp(-z * z))


def _gelu_exact(x):
    # PyTorch F.gelu default (approximate='none'): 0.5*x*(1+erf(x/sqrt(2)))
    return 0.5 * x * (1.0 + _erf(x * 0.7071067811865476))


# ----------------------------------------------------------------------------
# Dense (Linear + bias) kernel for encoder / decoder — M-tiled & pipelined,
# output feature dim padded to a multiple of 128 for lane-dense stores.
# ----------------------------------------------------------------------------
def _linear_kernel(x_ref, w_ref, b_ref, o_ref):
    o_ref[...] = _mm(x_ref[...], w_ref[...]) + b_ref[...]


def linear_pallas(x2d, w, b, tm=512):
    M, K = x2d.shape
    N = w.shape[1]
    Np = pl.cdiv(N, 128) * 128          # lane-dense output (avoid vst.msk)
    if Np != N:
        w = jnp.pad(w, ((0, 0), (0, Np - N)))
        b = jnp.pad(b, ((0, 0), (0, Np - N)))
    tm = min(tm, M)
    out = pl.pallas_call(
        _linear_kernel,
        out_shape=jax.ShapeDtypeStruct((M, Np), jnp.float32),
        grid=(pl.cdiv(M, tm),),
        in_specs=[
            pl.BlockSpec((tm, K), lambda i: (i, 0)),
            pl.BlockSpec((K, Np), lambda i: (0, 0)),
            pl.BlockSpec((1, Np), lambda i: (0, 0)),
        ],
        out_specs=pl.BlockSpec((tm, Np), lambda i: (i, 0)),
        compiler_params=pltpu.CompilerParams(
            dimension_semantics=("parallel",),
            vmem_limit_bytes=_vmem_limit(),
        ),
    )(x2d, w, b)
    return out[:, :N] if Np != N else out


# ----------------------------------------------------------------------------
# HawkBlock stack kernel: grid = (batch_tiles, num_blocks).  One grid step =
# one layer applied to one batch tile.  The activation lives in the output
# block (resident across the layer axis); per-layer weights stream in.
#   Layer: RMSNorm -> RG-LRU -> residual -> RMSNorm -> GatedMLP -> residual
# ----------------------------------------------------------------------------
def _hawk_layer_kernel(
    x_ref,        # (bt, T, D)   encoder output tile (read only at l == 0)
    g1_ref,       # (1, D)       hawk_norm.gamma * sqrt(D)   (pre-folded)
    w_in_ref,     # (D, 2H)      RGLRU.input.weight^T
    conv_w_ref,   # (K, H)       depthwise conv weight, tap-major
    conv_b_ref,   # (1, H)
    w_gates_ref,  # (H, 2H)      RGLRU.gates.weight^T
    b_gates_ref,  # (1, 2H)
    c_ref,        # (1, H)       -8 * softplus(forget_base)  (pre-folded)
    w_out_ref,    # (H, D)       RGLRU.output.weight^T
    g2_ref,       # (1, D)       hawk_gmlp_norm.gamma * sqrt(D)
    w_grow_ref,   # (D, 2G)      GatedMLP.grow.weight^T
    w_shrink_ref, # (G, D)       GatedMLP.shrink.weight^T
    o_ref,        # (bt, T, D)   resident activation / final output
):
    BT, T, D = x_ref.shape
    K, H = conv_w_ref.shape
    G = w_shrink_ref.shape[0]
    M = BT * T

    CH = 8 if T % 8 == 0 else T        # scan chunk = one f32 sublane group
    NC = T // CH

    l = pl.program_id(1)

    @pl.when(l == 0)
    def _init():
        o_ref[...] = x_ref[...]

    x2 = o_ref[...].reshape(M, D)       # flatten (batch_tile, T) -> bigger MXU M

    # ---------------- RMSNorm #1 :  (gamma*sqrt(D)) * x / ||x||
    inv = jax.lax.rsqrt(jnp.sum(x2 * x2, axis=-1, keepdims=True) + 1e-12)
    xn = x2 * inv * g1_ref[...]

    # ---------------- RG-LRU input projection; gelu(gate) applied immediately
    # so only the gelu'd tensor stays live across conv + gates + scan.
    u = _mm(xn, w_in_ref[...])                              # (M, 2H)
    gate_g = _gelu_exact(u[:, :H])                          # (M, H)
    v3 = u[:, H:].reshape(BT, T, H)

    # ---------------- depthwise causal conv1d (kernel_size=K, padding=K-1, :T)
    # y[t] = b + sum_k w[k] * v[t-(K-1-k)]; shifts via XLU roll + iota mask.
    t_idx = jax.lax.broadcasted_iota(jnp.int32, (BT, T, H), 1)   # hoisted once
    cw = conv_w_ref[...]                                    # (K, H)
    acc = cw[K - 1:K, :] * v3
    for s in range(1, K):
        vs = jnp.where(t_idx >= s, pltpu.roll(v3, shift=s, axis=1), 0.0)
        acc = acc + cw[K - 1 - s:K - s, :] * vs
    y3 = acc + conv_b_ref[...]                              # (BT, T, H)
    y2 = y3.reshape(M, H)

    # ---------------- gates + RG-LRU coefficients
    g = _mm(y2, w_gates_ref[...]) + b_gates_ref[...]        # (M, 2H)
    alpha = jnp.exp(c_ref[...] * _sigmoid(g[:, :H]))        # (M, H)
    beta = jnp.sqrt(1.0 - alpha * alpha + 1e-6)             # matches reference
    xs = beta * _sigmoid(g[:, H:]) * y2

    A_all = alpha.reshape(BT, T, H)
    X_all = xs.reshape(BT, T, H)

    # ---------------- linear recurrence h[t] = alpha[t]*h[t-1] + xs[t]
    # Chunked Hillis-Steele scan (log2(CH) shifted FMAs per chunk), statically
    # unrolled over chunks; shifts via sublane roll + hoisted mask; the
    # cross-chunk carry flows in registers (no VMEM scratch round-trips).
    c_idx = jax.lax.broadcasted_iota(jnp.int32, (BT, CH, H), 1)
    carry = jnp.zeros((BT, 1, H), jnp.float32)
    chunks = []
    for c in range(NC):
        t0 = c * CH
        A = A_all[:, t0:t0 + CH, :]
        X = X_all[:, t0:t0 + CH, :]
        d = 1
        while d < CH:                                       # ceil(log2(CH)) steps
            m = c_idx >= d
            As = jnp.where(m, pltpu.roll(A, shift=d, axis=1), 1.0)
            Xs = jnp.where(m, pltpu.roll(X, shift=d, axis=1), 0.0)
            X = A * Xs + X
            A = A * As
            d *= 2
        hc = X + A * carry                                  # fold in carry
        chunks.append(hc)
        carry = hc[:, CH - 1:CH, :]
    h3 = chunks[0] if NC == 1 else jnp.concatenate(chunks, axis=1)
    h2 = h3.reshape(M, H)

    # ---------------- RG-LRU output projection + residual (dropout = identity)
    x2 = x2 + _mm(gate_g * h2, w_out_ref[...])              # (M, D)

    # ---------------- RMSNorm #2 + GatedMLP + residual
    inv2 = jax.lax.rsqrt(jnp.sum(x2 * x2, axis=-1, keepdims=True) + 1e-12)
    xn2 = x2 * inv2 * g2_ref[...]
    u2 = _mm(xn2, w_grow_ref[...])                          # (M, 2G)
    x2 = x2 + _mm(_gelu_exact(u2[:, :G]) * u2[:, G:], w_shrink_ref[...])

    o_ref[...] = x2.reshape(BT, T, D)


_STACK_ORDER = ("g1", "w_in", "conv_w", "conv_b", "w_gates", "b_gates",
                "c", "w_out", "g2", "w_grow", "w_shrink")


def prepare_block_stack(blocks):
    """Stack per-block weights along a leading layer axis + fold constant math."""
    D = blocks[0]["g1"].shape[-1]
    sqrt_d = float(D) ** 0.5

    def stk(name):
        return jnp.stack([blk[name] for blk in blocks], axis=0)

    # TODO(synk): for v5e-optimal lane alignment, pad H/G/D (and the stacked
    # weights) up to multiples of 128 when expansion produces odd sizes.
    return {
        "g1": stk("g1") * sqrt_d,
        "w_in": stk("w_in"),
        "conv_w": stk("conv_w"),
        "conv_b": stk("conv_b"),
        "w_gates": stk("w_gates"),
        "b_gates": stk("b_gates"),
        "c": -8.0 * jax.nn.softplus(stk("fb")),
        "w_out": stk("w_out"),
        "g2": stk("g2") * sqrt_d,
        "w_grow": stk("w_grow"),
        "w_shrink": stk("w_shrink"),
    }


def _per_layer_spec(arr):
    """BlockSpec streaming one layer's slice: leading layer dim squeezed."""
    rest = arr.shape[1:]
    zeros = (0,) * len(rest)
    return pl.BlockSpec((None,) + rest, lambda b, l, _z=zeros: (l,) + _z)


def hawk_blocks_forward(x, stack):
    B, T, D = x.shape
    L = stack["w_in"].shape[0]
    H = stack["w_gates"].shape[1]

    # Batch tile: target ~512 matmul rows (bt*T), capped by VMEM budget and
    # bounded so the "parallel" batch axis has >= 2 grid steps (v7x: 2 TCs).
    bt = max(1, min(B, max(1, 512 // max(T, 1))))
    if B >= 2:
        bt = min(bt, max(1, B // 2))
    per_row_bytes = T * (4 * D + 12 * H) * 4          # rough in-flight bytes/row
    bt = max(1, min(bt, (_vmem_limit() // 3) // max(per_row_bytes, 1)))

    Bp = pl.cdiv(B, bt) * bt
    if Bp != B:
        x = jnp.concatenate([x, jnp.zeros((Bp - B, T, D), x.dtype)], axis=0)

    weights = [stack[k] for k in _STACK_ORDER]
    in_specs = [pl.BlockSpec((bt, T, D), lambda b, l: (b, 0, 0))] + [
        _per_layer_spec(w) for w in weights
    ]

    out = pl.pallas_call(
        _hawk_layer_kernel,
        out_shape=jax.ShapeDtypeStruct((Bp, T, D), jnp.float32),
        grid=(Bp // bt, L),                 # layer axis innermost ("arbitrary")
        in_specs=in_specs,
        out_specs=pl.BlockSpec((bt, T, D), lambda b, l: (b, 0, 0)),
        compiler_params=pltpu.CompilerParams(
            dimension_semantics=("parallel", "arbitrary"),
            vmem_limit_bytes=_vmem_limit(),
        ),
    )(x, *weights)
    return out[:B]


# ----------------------------------------------------------------------------
# Full Hawk forward (encoder -> block stack -> pooling -> decoder -> softmax)
# ----------------------------------------------------------------------------
def hawk_forward(x, params, pooling="mean"):
    B, T, Fin = x.shape
    h = linear_pallas(x.reshape(B * T, Fin), params["enc_w"], params["enc_b"])
    h = h.reshape(B, T, -1)

    stack = prepare_block_stack(params["blocks"])
    h = hawk_blocks_forward(h, stack)

    if pooling == "mean":
        h = jnp.mean(h, axis=1)
    elif pooling == "max":
        h = jnp.max(h, axis=1)
    elif pooling == "last":
        h = h[:, -1, :]
    else:
        # no pooling: decode every timestep, softmax over dim=1 (time), as in torch
        D = h.shape[-1]
        logits = linear_pallas(h.reshape(B * T, D), params["dec_w"], params["dec_b"])
        logits = logits.reshape(B, T, -1)
        return jax.nn.softmax(logits, axis=1)

    logits = linear_pallas(h, params["dec_w"], params["dec_b"])
    # TODO(synk): `dual=True` path uses an undefined MATCH module in the reference; dual=False implemented.
    return jax.nn.softmax(logits, axis=1)


# ----------------------------------------------------------------------------
# Deterministic parameter construction (mirrors the PyTorch __init__ shapes)
# ----------------------------------------------------------------------------
def init_forget_gate(size, a=0.001, b=0.1, lo=-9.0, hi=-4.323):
    x = jnp.log(jnp.expm1(jnp.linspace(a, b, size)))
    x = (x - x.min()) / (x.max() - x.min())
    x = x * abs(hi - lo) + lo
    return x.astype(jnp.float32)


def make_params(key, *, input_dim, hidden_dim, output_dim, expansion,
                gmlp_expansion, kernel_size, num_blocks):
    D = hidden_dim
    H = int(D * expansion)
    G = int(D * gmlp_expansion)
    K = kernel_size

    n = functools.partial(jax.random.normal, dtype=jnp.float32)
    keys = jax.random.split(key, 4 + num_blocks)

    params = {
        "enc_w": n(keys[0], (input_dim, D)) * input_dim ** -0.5,
        "enc_b": n(keys[1], (1, D)) * 0.01,
        "dec_w": n(keys[2], (D, output_dim)) * D ** -0.5,
        "dec_b": n(keys[3], (1, output_dim)) * 0.01,
        "blocks": [],
    }

    for i in range(num_blocks):
        ks = jax.random.split(keys[4 + i], 8)
        blk = {
            "g1": jnp.ones((1, D), jnp.float32),
            "w_in": n(ks[0], (D, 2 * H)) * D ** -0.5,
            "conv_w": n(ks[1], (K, H)) * (K ** -0.5),   # tap-major depthwise weight
            "conv_b": n(ks[2], (1, H)) * 0.01,
            "w_gates": n(ks[3], (H, 2 * H)) * H ** -0.5,
            "b_gates": n(ks[4], (1, 2 * H)) * 0.01,
            "fb": init_forget_gate(H).reshape(1, H),
            "w_out": n(ks[5], (H, D)) * H ** -0.5,
            "g2": jnp.ones((1, D), jnp.float32),
            "w_grow": n(ks[6], (D, 2 * G)) * D ** -0.5,
            "w_shrink": n(ks[7], (G, D)) * G ** -0.5,
        }
        params["blocks"].append(blk)
    return params


if __name__ == "__main__":
    B, T = 2, 8
    input_dim, hidden_dim, output_dim = 16, 32, 8
    expansion, gmlp_expansion, kernel_size, num_blocks = 2, 2, 4, 2

    key = jax.random.PRNGKey(0)
    kp, kx = jax.random.split(key)
    params = make_params(
        kp,
        input_dim=input_dim,
        hidden_dim=hidden_dim,
        output_dim=output_dim,
        expansion=expansion,
        gmlp_expansion=gmlp_expansion,
        kernel_size=kernel_size,
        num_blocks=num_blocks,
    )
    x = jax.random.normal(kx, (B, T, input_dim), jnp.float32)

    out = hawk_forward(x, params, pooling="mean")
    jax.block_until_ready(out)
    assert out.shape == (B, output_dim)
    assert bool(jnp.all(jnp.isfinite(out)))
    print("KERNEL_OK")
</pallas_src>

<mosaic_0001>
module attributes {stable_mosaic.version = 11 : i64} {
  func.func @_linear_kernel(%arg0: i32, %arg1: memref<16x16xf32, #tpu.memory_space<vmem>>, %arg2: memref<16x128xf32, #tpu.memory_space<vmem>>, %arg3: memref<1x128xf32, #tpu.memory_space<vmem>>, %arg4: memref<16x128xf32, #tpu.memory_space<vmem>>) attributes {dimension_semantics = [#tpu.dimension_semantics<parallel>], iteration_bounds = array<i64: 1>, scalar_prefetch = 0 : i64, scratch_operands = 0 : i64, tpu.core_type = #tpu.core_type<tc>, window_params = [{transform_indices = @transform_0, window_bounds = array<i64: 16, 16>}, {pipeline_mode = #tpu.pipeline_mode<synchronous>, transform_indices = @transform_1, window_bounds = array<i64: 16, 128>}, {pipeline_mode = #tpu.pipeline_mode<synchronous>, transform_indices = @transform_2, window_bounds = array<i64: 1, 128>}, {transform_indices = @transform_3, window_bounds = array<i64: 16, 128>}]} {
    %c0 = arith.constant 0 : index
    %c0_0 = arith.constant 0 : index
    %0 = vector.load %arg1[%c0, %c0_0] : memref<16x16xf32, #tpu.memory_space<vmem>>, vector<16x16xf32>
    %c0_1 = arith.constant 0 : index
    %c0_2 = arith.constant 0 : index
    %1 = vector.load %arg2[%c0_1, %c0_2] : memref<16x128xf32, #tpu.memory_space<vmem>>, vector<16x128xf32>
    %2 = arith.truncf %0 : vector<16x16xf32> to vector<16x16xbf16>
    %3 = arith.truncf %1 : vector<16x128xf32> to vector<16x128xbf16>
    %cst = arith.constant dense<0.000000e+00> : vector<16x128xf32>
    %4 = tpu.matmul %2, %3, %cst {dimension_numbers = #tpu.dot_dimension_numbers<[1], [0], [0], [1], [0, 0, 1, 1], [], []>} : vector<16x16xbf16>, vector<16x128xbf16>, vector<16x128xf32> -> vector<16x128xf32>
    %c0_3 = arith.constant 0 : index
    %c0_4 = arith.constant 0 : index
    %5 = vector.load %arg3[%c0_3, %c0_4] : memref<1x128xf32, #tpu.memory_space<vmem>>, vector<1x128xf32>
    %6 = vector.broadcast %5 : vector<1x128xf32> to vector<16x128xf32>
    %7 = arith.addf %4, %6 : vector<16x128xf32>
    %c0_5 = arith.constant 0 : index
    %c0_6 = arith.constant 0 : index
    %8 = vector.load %arg4[%c0_5, %c0_6] : memref<16x128xf32, #tpu.memory_space<vmem>>, vector<16x128xf32>
    tpu.vector_store %arg4[%c0_5, %c0_6], %7 {strides = array<i32>} : memref<16x128xf32, #tpu.memory_space<vmem>>, vector<16x128xf32>,
    return
  }
  func.func @transform_0(%arg0: i32) -> (i32, i32) {
    %c0_i32 = arith.constant 0 : i32
    %c0_i32_0 = arith.constant 0 : i32
    return %arg0, %c0_i32 : i32, i32
  }
  func.func @transform_1(%arg0: i32) -> (i32, i32) {
    %c0_i32 = arith.constant 0 : i32
    %c0_i32_0 = arith.constant 0 : i32
    %c0_i32_1 = arith.constant 0 : i32
    return %c0_i32, %c0_i32_0 : i32, i32
  }
  func.func @transform_2(%arg0: i32) -> (i32, i32) {
    %c0_i32 = arith.constant 0 : i32
    %c0_i32_0 = arith.constant 0 : i32
    %c0_i32_1 = arith.constant 0 : i32
    return %c0_i32, %c0_i32_0 : i32, i32
  }
  func.func @transform_3(%arg0: i32) -> (i32, i32) {
    %c0_i32 = arith.constant 0 : i32
    %c0_i32_0 = arith.constant 0 : i32
    return %arg0, %c0_i32 : i32, i32
  }
}

</mosaic_0001>

<bundles_post_ra>
// kernel: tpu_custom_call.1
= control target key start
LH: loop header
LB: loop body
LE: loop exit
PB: predicated region body
PF: predicated region fallthrough
CT: control target
= control target key end

     0   :  { %8 = vsyncpa [#allocation3], 0  ;;  %s286_s0 = inlined_call_operand.hbm [shape: f32[16,16], index: 0, kind: input, shape index: {}]   ;;  %s287_s1 = inlined_call_operand.hbm [shape: f32[16,128], index: 1, kind: input, shape index: {}]   ;;  %s288_s2 = inlined_call_operand.vmem [shape: f32[1,128], index: 2, kind: input, shape index: {}]   ;;  %s289_s3 = inlined_call_operand.hbm [shape: f32[16,128], index: 3, kind: output, shape index: {}]  }
   0x1   :  { %9 = vsyncpa [#allocation6], 0 }
   0x2   :  { %10 = vsyncpa [#allocation4], 0  ;;  %s211_s12 = smov [#allocation2]   ;;  %s139_s16 = scalar_lea.hbm %s286_s0, 256 }
   0x3   :  { %s16_s13 = sshll.u32 %s211_s12, 4  ;;  %p140_p0 = scmp.ne.s32.totalorder %s286_s0, %s139_s16  ;;  %s17_s13 = int_to_ptr.vmem [resolvable:$true] %s16_s13 }
   0x4   :  { %p143_p1 = scmp.lt.u32.totalorder %s139_s16, %s286_s0 }
   0x6   :  { %p145_p2 = pnand %p143_p1, %p140_p0 }
   0x8   :  { %148 = shalt.err (!%p145_p2)
}
   0x9   :  { %s149_s21 = scalar_lea.vmem %s17_s13, 256  ;;  %p154_p4 = scmp.lt.s32.totalorder %s17_s13, %s17_s13 }
   0xa   :  { %p150_p3 = scmp.ne.s32.totalorder %s17_s13, %s149_s21  ;;  %p155_p5 = scmp.lt.s32.totalorder %s149_s21, %s149_s21 }
   0xc   :  { %p156_p6 = por %p155_p5, %p154_p4 }
   0xe   :  { %p157_p7 = pnand %p156_p6, %p150_p3 }
  0x10   :  { %160 = shalt.err (!%p157_p7)
}
  0x11   :  { %s212_s22 = smov 128   ;;  %s213_s23 = smov 8  }
  0x12   :  { %22 = dma.hbm_to_vmem [thread:$0]  %s286_s0, 256, %s17_s13, [#allocation3], %s212_s22, %s212_s22, %s213_s23  }
  0x13   :  { %s214_s26 = smov [#allocation5]   ;;  %s161_s30 = scalar_lea.hbm %s287_s1, 256 }
  0x14   :  { %s28_s27 = sshll.u32 %s214_s26, 4  ;;  %p162_p8 = scmp.ne.s32.totalorder %s287_s1, %s161_s30  ;;  %s29_s27 = int_to_ptr.vmem [resolvable:$true] %s28_s27 }
  0x15   :  { %p165_p9 = scmp.lt.u32.totalorder %s161_s30, %s287_s1 }
  0x17   :  { %p167_p10 = pnand %p165_p9, %p162_p8 }
  0x19   :  { %170 = shalt.err (!%p167_p10)
}
  0x1a   :  { %s171_s8 = scalar_lea.vmem %s29_s27, 256  ;;  %p176_p12 = scmp.lt.s32.totalorder %s29_s27, %s29_s27 }
  0x1b   :  { %p172_p11 = scmp.ne.s32.totalorder %s29_s27, %s171_s8  ;;  %p177_p13 = scmp.lt.s32.totalorder %s171_s8, %s171_s8 }
  0x1d   :  { %p178_p0 = por %p177_p13, %p176_p12 }
  0x1f   :  { %p179_p1 = pnand %p178_p0, %p172_p11 }
  0x21   :  { %182 = shalt.err (!%p179_p1)
}
  0x22   :  { %34 = dma.hbm_to_vmem [thread:$0]  %s287_s1, 256, %s29_s27, [#allocation6], %s212_s22, %s212_s22, %s213_s23  }
  0x23   :  { %205 = dma.done.wait [#allocation3], 256  }
  0x24   :  { %206 = vsyncadd [#allocation3], 4294967040 }
  0x25   :  { %207 = dma.done.wait [#allocation6], 256  }
  0x26   :  { %208 = vsyncadd [#allocation6], 4294967040  ;;  %v215_v0 = vmov 0.0   ;;  %vm216_vm0 = vmmov 0   ;;  %v46_v1 = vld [vmem:[#allocation5] sm:$0xff]  ;;  %v47_v2 = vld [vmem:[#allocation5 + $0x8] sm:$0xff] }
  0x27   :  { %126 = vmatprep.subr.bf16.mxu0 %v215_v0  ;;  %128 = vmatprep.mubr.msk.bf16.mxu0 %vm216_vm0, %v215_v0  ;;  %v44_v3 = vld [vmem:[#allocation2] sm:$0xff]  ;;  %v49_v4 = vpack.c.bf16 %v47_v2, %v46_v1  ;;  %v45_v5 = vld [vmem:[#allocation2 + $0x8] sm:$0xff]  ;;  %vm57_vm1 = vcmask 130048   ;;  %s217_s1 = smov [#allocation7]  }
  0x28   :  { %v48_v6 = vpack.c.bf16 %v45_v5, %v44_v3  ;;  %v122_v7 = vld [vmem:[%s288_s2] ss:$0 sm:$0xff]  ;;  %s109_s12 = sshll.u32 %s217_s1, 4  ;;  %s110_s12 = int_to_ptr.vmem [resolvable:$true] %s109_s12 }
  0x29   :  { %127 = vmatpush3.bf16.msra.mxu0 %v49_v4  ;;  %s183_s13 = scalar_lea.vmem %s110_s12, 256  ;;  %p188_p3 = scmp.lt.s32.totalorder %s110_s12, %s110_s12 }
  0x2a   :  { %p184_p2 = scmp.ne.s32.totalorder %s110_s12, %s183_s13  ;;  %p189_p4 = scmp.lt.s32.totalorder %s183_s13, %s183_s13 }
  0x2c   :  { %129 = vmatmul.mubr.msk.bf16.vlgmr.msra.gmra.mrb[0].mxu0 %vm57_vm1, %v48_v6  ;;  %p190_p5 = por %p189_p4, %p188_p3 }
  0x2e   :  { %p191_p6 = pnand %p190_p5, %p184_p2 }
  0xff   :  { %v95_v8 = vpop.f32.mrb[0].mxu0 }
 0x100   :  { %v96_v9 = vadd.f32 %v122_v7, %v95_v8  ;;  %v130_v10 = vpop.f32.mrb[1].mxu0 }
 0x101   :  { %v98_v11 = vpop.f32.mrb[2].mxu0 }
 0x102   :  { %102 = vst [vmem:[#allocation7] sm:$0xff] %v96_v9  ;;  %v99_v12 = vadd.f32 %v122_v7, %v98_v11  ;;  %v131_v13 = vpop.f32.mrb[3].mxu0 }
 0x104   :  { %103 = vst [vmem:[#allocation7 + $0x8] sm:$0xff] %v99_v12 }
 0x105   :  { %194 = shalt.err (!%p191_p6)
}
 0x106   :  { %s195_s15 = scalar_lea.hbm %s289_s3, 256 }
 0x107   :  { %p196_p7 = scmp.ne.s32.totalorder %s289_s3, %s195_s15  ;;  %p199_p8 = scmp.lt.u32.totalorder %s195_s15, %s289_s3 }
 0x109   :  { %p201_p9 = pnand %p199_p8, %p196_p7 }
 0x10b   :  { %204 = shalt.err (!%p201_p9)
}
 0x10c   :  { %115 = dma.vmem_to_hbm [thread:$0]  %s110_s12, 256, %s289_s3, [#allocation4], %s212_s22, %s212_s22, %s213_s23  }
 0x10d   :  { %209 = dma.done.wait [#allocation4], 256  }
 0x10e   :  { %210 = vsyncadd [#allocation4], 4294967040 }
 0x10f   :  { %119 = vsyncpa [#allocation3], 1 }
 0x110   :  { %120 = vsyncpa [#allocation6], 1 }
 0x111   :  { %121 = vsyncpa [#allocation4], 1 }

</bundles_post_ra>
